<compile_context>
chip_gen: v6e
topology: v6e:2x2x1
jax: 0.10.0
libtpu: 0.0.40
codegen_flags: <defaults>
</compile_context>

<pallas_src>
import numpy as np
import jax
import jax.numpy as jnp
from jax.experimental import pallas as pl
from jax.experimental.pallas import tpu as pltpu


# ----------------------------------------------------------------------------
# host-side helpers (pure layout / constant construction)
# ----------------------------------------------------------------------------
def _bilinear_matrix(out_size, in_size):
    """1-D interpolation matrix (out_size, in_size) for align_corners=True."""
    A = np.zeros((out_size, in_size), np.float32)
    if in_size == 1:
        A[:, 0] = 1.0
        return A
    if out_size == 1:          # align_corners=True maps output 0 -> input 0
        A[0, 0] = 1.0
        return A
    i = np.arange(out_size)
    src = i * (in_size - 1) / (out_size - 1)
    i0 = np.clip(np.floor(src).astype(np.int64), 0, in_size - 2)
    frac = (src - i0).astype(np.float32)
    A[i, i0] += 1.0 - frac
    A[i, i0 + 1] += frac
    return A


def _upsample_operator_tiled(H, W, Hf, Wf, B):
    """(B*Hf*Wf, H*W) operator: row b*S+s equals the separable bilinear
    (align_corners=True) operator kron(Ah, Aw).T row s.  The B-fold row
    tiling pairs with the segment mask so the whole batch upsamples in one
    lane-dense MXU matmul without any in-kernel reshape."""
    ah = _bilinear_matrix(H, Hf)                      # (H, Hf)
    aw = _bilinear_matrix(W, Wf)                      # (W, Wf)
    a_up = np.kron(ah, aw).T                          # (Hf*Wf, H*W)
    return jnp.asarray(np.tile(a_up, (B, 1)))         # (B*Hf*Wf, H*W)


def _segment_mask(B, S):
    """(B, B*S) 0/1 mask selecting image b's segment of the flat (B*S) axis."""
    return jnp.asarray(np.kron(np.eye(B, dtype=np.float32),
                               np.ones((1, S), np.float32)))


def _im2col_3x3_s2_T(x):
    """im2col for a 3x3, stride-2, pad-1 conv in the *flipped* layout:
    returns (Cin*9, B*Ho*Wo), column index = b*(Ho*Wo) + ho*Wo + wo.

    TODO(synk): build these patches inside the kernel with strided pl.ds
    slices (memory_space=pl.ANY input) to avoid the 9x expanded HBM tensor —
    that is the dominant HBM cost at real sizes on v5e/v6e.
    """
    B, Cin, H, W = x.shape
    Ho, Wo = H // 2, W // 2
    xp = jnp.pad(x, ((0, 0), (0, 0), (1, 1), (1, 1)))
    cols = []
    for kh in range(3):
        for kw in range(3):
            cols.append(xp[:, :, kh:kh + 2 * Ho:2, kw:kw + 2 * Wo:2])
    p = jnp.stack(cols, axis=2)                       # (B, Cin, 9, Ho, Wo)
    p = p.transpose(1, 2, 0, 3, 4)                    # (Cin, 9, B, Ho, Wo)
    return p.reshape(Cin * 9, B * Ho * Wo), Ho, Wo    # K-index = cin*9+kh*3+kw


# ----------------------------------------------------------------------------
# Pallas kernel: conv+ReLU -> CAM -> ReLU -> upsample -> global normalize
# ----------------------------------------------------------------------------
def _gradcam_kernel(patches_ref, wc_ref, wvec_ref, mask_ref, aup_ref, out_ref):
    # patches_ref: (K+1, B*S)  im2col (flipped layout) with a ones row (bias)
    # wc_ref     : (Cf, K+1)   conv weight with bias column folded in
    # wvec_ref   : (B, Cf)     per-image GradCAM channel weights
    # mask_ref   : (B, B*S)    segment-select mask (image b's columns)
    # aup_ref    : (B*S, H*W)  row-tiled bilinear upsample operator
    # out_ref    : (B, H*W)    normalized CAM, lane-dense output slab

    # Backbone conv as one MXU matmul; feat stays (Cf, B*S) = ~1 vreg, so the
    # ReLU is a single VPU op and no transposed contraction is needed later.
    featT = jnp.dot(wc_ref[...], patches_ref[...],
                    preferred_element_type=jnp.float32)          # (Cf, B*S)
    featT = jnp.maximum(featT, 0.0)

    # Channel-weighted CAM for the whole batch in one matmul; only the
    # diagonal segments (image b against its own columns) are meaningful,
    # the segment mask zeroes the rest after the ReLU.
    camP = jnp.dot(wvec_ref[...], featT,
                   preferred_element_type=jnp.float32)           # (B, B*S)
    cam = jnp.maximum(camP, 0.0) * mask_ref[...]                 # ReLU + select

    # Bilinear upsample (align_corners=True) as one lane-dense MXU matmul.
    cam_up = jnp.dot(cam, aup_ref[...],
                     preferred_element_type=jnp.float32)         # (B, H*W)

    # Fused global (whole-batch) min/max normalization — reference semantics.
    # TODO(synk): reference PyTorch divides by max() with no epsilon; a
    # constant CAM yields NaN there too — kept identical on purpose.
    mn = jnp.min(cam_up)
    mx = jnp.max(cam_up)
    out_ref[...] = (cam_up - mn) / (mx - mn)


def gradcam_fused(patchesT, wc_aug, weights, mask, aup_tiled, HW):
    Kp1, BS = patchesT.shape
    Cf = wc_aug.shape[0]
    B = weights.shape[0]
    # Whole problem (~160 KiB of operands) lives in VMEM for one grid step;
    # every BlockSpec is a full-array block, the output is lane-dense (HW is
    # a multiple of 128).  Multi-step batch tiling / Buffered(1) residents
    # only matter at much larger B (see module TODO).
    return pl.pallas_call(
        _gradcam_kernel,
        grid=(1,),
        in_specs=[
            pl.BlockSpec((Kp1, BS), lambda i: (0, 0)),   # patches (+ ones row)
            pl.BlockSpec((Cf, Kp1), lambda i: (0, 0)),   # conv weight (+ bias col)
            pl.BlockSpec((B, Cf), lambda i: (0, 0)),     # per-image weights
            pl.BlockSpec((B, BS), lambda i: (0, 0)),     # segment mask
            pl.BlockSpec((BS, HW), lambda i: (0, 0)),    # upsample operator
        ],
        out_specs=pl.BlockSpec((B, HW), lambda i: (0, 0)),
        out_shape=jax.ShapeDtypeStruct((B, HW), jnp.float32),
        compiler_params=pltpu.CompilerParams(
            dimension_semantics=("arbitrary",)),
    )(patchesT, wc_aug, weights, mask, aup_tiled)


# ----------------------------------------------------------------------------
# GradCAM forward (glue around the single Pallas kernel)
# ----------------------------------------------------------------------------
def gradcam_forward(x, ind, params):
    B, Cin, H, W = x.shape
    conv_w, conv_b = params["conv_w"], params["conv_b"]
    fc_w = params["fc_w"]
    Cf = conv_w.shape[0]

    # im2col in glue (XLA); flipped (K, B*S) layout. See TODO above.
    patchesT, Hf, Wf = _im2col_3x3_s2_T(x)            # (Cin*9, B*S)
    S = Hf * Wf
    BS = B * S

    # Fold the conv bias into the matmul: ones row on patches, bias column
    # on the weight (K -> K+1).
    patchesT = jnp.concatenate(
        [patchesT, jnp.ones((1, BS), jnp.float32)], axis=0)       # (K+1, B*S)
    wc_aug = jnp.concatenate(
        [conv_w.reshape(Cf, -1), conv_b.reshape(Cf, 1)], axis=1)  # (Cf, K+1)

    # Closed-form autograd: logit = fc(GAP(feat)) is linear in feat, so
    #   grad[b,c,h,w] = fc_w[ind[b,0], c] / (Hf*Wf)  ->  weights[b,c].
    # The forward logits / gather do not affect the CAM output (fc bias is
    # therefore unused by the CAM).
    weights = fc_w[ind[:, 0]] / float(S)              # (B, Cf)

    # Precomputed constants for the batched, reshape-free kernel pipeline.
    mask = _segment_mask(B, S)                        # (B, B*S)
    aup = _upsample_operator_tiled(H, W, Hf, Wf, B)   # (B*S, H*W)

    cam_flat = gradcam_fused(patchesT, wc_aug, weights, mask, aup, H * W)
    return cam_flat.reshape(B, 1, H, W)


# ----------------------------------------------------------------------------
# main
# ----------------------------------------------------------------------------
if __name__ == "__main__":
    key = jax.random.PRNGKey(0)
    k_x, k_ind, k_cw, k_cb, k_fw, k_fb = jax.random.split(key, 6)

    B, Cin, H, W = 2, 4, 16, 16
    Cf, num_classes = 8, 10

    x = jax.random.normal(k_x, (B, Cin, H, W), jnp.float32)
    ind = jax.random.randint(k_ind, (B, 1), 0, num_classes, jnp.int32)

    params = {
        "conv_w": 0.1 * jax.random.normal(k_cw, (Cf, Cin, 3, 3), jnp.float32),
        "conv_b": 0.01 * jax.random.normal(k_cb, (Cf,), jnp.float32),
        "fc_w": 0.1 * jax.random.normal(k_fw, (num_classes, Cf), jnp.float32),
        # fc bias kept for parameter parity with the module; the CAM output
        # does not depend on it.
        "fc_b": 0.01 * jax.random.normal(k_fb, (num_classes,), jnp.float32),
    }

    cam = gradcam_forward(x, ind, params)
    cam = jax.block_until_ready(cam)
    assert cam.shape == (B, 1, H, W)
    print("KERNEL_OK")
</pallas_src>

<mosaic_0001>
module attributes {stable_mosaic.version = 11 : i64} {
  func.func @_gradcam_kernel(%arg0: i32, %arg1: memref<37x128xf32, #tpu.memory_space<vmem>>, %arg2: memref<8x37xf32, #tpu.memory_space<vmem>>, %arg3: memref<2x8xf32, #tpu.memory_space<vmem>>, %arg4: memref<2x128xf32, #tpu.memory_space<vmem>>, %arg5: memref<128x256xf32, #tpu.memory_space<vmem>>, %arg6: memref<2x256xf32, #tpu.memory_space<vmem>>) attributes {dimension_semantics = [#tpu.dimension_semantics<arbitrary>], iteration_bounds = array<i64: 1>, scalar_prefetch = 0 : i64, scratch_operands = 0 : i64, tpu.core_type = #tpu.core_type<tc>, window_params = [{pipeline_mode = #tpu.pipeline_mode<synchronous>, transform_indices = @transform_0, window_bounds = array<i64: 37, 128>}, {pipeline_mode = #tpu.pipeline_mode<synchronous>, transform_indices = @transform_1, window_bounds = array<i64: 8, 37>}, {pipeline_mode = #tpu.pipeline_mode<synchronous>, transform_indices = @transform_2, window_bounds = array<i64: 2, 8>}, {pipeline_mode = #tpu.pipeline_mode<synchronous>, transform_indices = @transform_3, window_bounds = array<i64: 2, 128>}, {pipeline_mode = #tpu.pipeline_mode<synchronous>, transform_indices = @transform_4, window_bounds = array<i64: 128, 256>}, {pipeline_mode = #tpu.pipeline_mode<synchronous>, transform_indices = @transform_5, window_bounds = array<i64: 2, 256>}]} {
    %c0 = arith.constant 0 : index
    %c0_0 = arith.constant 0 : index
    %0 = vector.load %arg2[%c0, %c0_0] : memref<8x37xf32, #tpu.memory_space<vmem>>, vector<8x37xf32>
    %c0_1 = arith.constant 0 : index
    %c0_2 = arith.constant 0 : index
    %1 = vector.load %arg1[%c0_1, %c0_2] : memref<37x128xf32, #tpu.memory_space<vmem>>, vector<37x128xf32>
    %cst = arith.constant dense<0.000000e+00> : vector<8x128xf32>
    %2 = tpu.matmul %0, %1, %cst {dimension_numbers = #tpu.dot_dimension_numbers<[1], [0], [0], [1], [0, 0, 1, 1], [], []>} : vector<8x37xf32>, vector<37x128xf32>, vector<8x128xf32> -> vector<8x128xf32>
    %cst_3 = arith.constant 0.000000e+00 : f32
    %3 = vector.broadcast %cst_3 : f32 to vector<8x128xf32>
    %4 = arith.maximumf %2, %3 : vector<8x128xf32>
    %c0_4 = arith.constant 0 : index
    %c0_5 = arith.constant 0 : index
    %5 = vector.load %arg3[%c0_4, %c0_5] : memref<2x8xf32, #tpu.memory_space<vmem>>, vector<2x8xf32>
    %cst_6 = arith.constant dense<0.000000e+00> : vector<2x128xf32>
    %6 = tpu.matmul %5, %4, %cst_6 {dimension_numbers = #tpu.dot_dimension_numbers<[1], [0], [0], [1], [0, 0, 1, 1], [], []>} : vector<2x8xf32>, vector<8x128xf32>, vector<2x128xf32> -> vector<2x128xf32>
    %cst_7 = arith.constant 0.000000e+00 : f32
    %7 = vector.broadcast %cst_7 : f32 to vector<2x128xf32>
    %8 = arith.maximumf %6, %7 : vector<2x128xf32>
    %c0_8 = arith.constant 0 : index
    %c0_9 = arith.constant 0 : index
    %9 = vector.load %arg4[%c0_8, %c0_9] : memref<2x128xf32, #tpu.memory_space<vmem>>, vector<2x128xf32>
    %10 = arith.mulf %8, %9 : vector<2x128xf32>
    %c0_10 = arith.constant 0 : index
    %c0_11 = arith.constant 0 : index
    %11 = vector.load %arg5[%c0_10, %c0_11] : memref<128x256xf32, #tpu.memory_space<vmem>>, vector<128x256xf32>
    %cst_12 = arith.constant dense<0.000000e+00> : vector<2x256xf32>
    %12 = tpu.matmul %10, %11, %cst_12 {dimension_numbers = #tpu.dot_dimension_numbers<[1], [0], [0], [1], [0, 0, 1, 1], [], []>} : vector<2x128xf32>, vector<128x256xf32>, vector<2x256xf32> -> vector<2x256xf32>
    %13 = vector.shape_cast %12 : vector<2x256xf32> to vector<1x2x256xf32>
    %cst_13 = arith.constant dense<0x7F800000> : vector<1xf32>
    %14 = vector.multi_reduction <minimumf>, %13, %cst_13 [1, 2] : vector<1x2x256xf32> to vector<1xf32>
    %15 = vector.shape_cast %14 : vector<1xf32> to vector<1x1x1xf32>
    %16 = vector.extract %15[0, 0, 0] : f32 from vector<1x1x1xf32>
    %17 = vector.shape_cast %12 : vector<2x256xf32> to vector<1x2x256xf32>
    %cst_14 = arith.constant dense<0xFF800000> : vector<1xf32>
    %18 = vector.multi_reduction <maximumf>, %17, %cst_14 [1, 2] : vector<1x2x256xf32> to vector<1xf32>
    %19 = vector.shape_cast %18 : vector<1xf32> to vector<1x1x1xf32>
    %20 = vector.extract %19[0, 0, 0] : f32 from vector<1x1x1xf32>
    %21 = vector.broadcast %16 : f32 to vector<2x256xf32>
    %22 = arith.subf %12, %21 : vector<2x256xf32>
    %23 = arith.subf %20, %16 : f32
    %24 = vector.broadcast %23 : f32 to vector<2x256xf32>
    %25 = arith.divf %22, %24 : vector<2x256xf32>
    %c0_15 = arith.constant 0 : index
    %c0_16 = arith.constant 0 : index
    %26 = vector.load %arg6[%c0_15, %c0_16] : memref<2x256xf32, #tpu.memory_space<vmem>>, vector<2x256xf32>
    tpu.vector_store %arg6[%c0_15, %c0_16], %25 {strides = array<i32>} : memref<2x256xf32, #tpu.memory_space<vmem>>, vector<2x256xf32>,
    return
  }
  func.func @transform_0(%arg0: i32) -> (i32, i32) {
    %c0_i32 = arith.constant 0 : i32
    %c0_i32_0 = arith.constant 0 : i32
    %c0_i32_1 = arith.constant 0 : i32
    return %c0_i32, %c0_i32_0 : i32, i32
  }
  func.func @transform_1(%arg0: i32) -> (i32, i32) {
    %c0_i32 = arith.constant 0 : i32
    %c0_i32_0 = arith.constant 0 : i32
    %c0_i32_1 = arith.constant 0 : i32
    return %c0_i32, %c0_i32_0 : i32, i32
  }
  func.func @transform_2(%arg0: i32) -> (i32, i32) {
    %c0_i32 = arith.constant 0 : i32
    %c0_i32_0 = arith.constant 0 : i32
    %c0_i32_1 = arith.constant 0 : i32
    return %c0_i32, %c0_i32_0 : i32, i32
  }
  func.func @transform_3(%arg0: i32) -> (i32, i32) {
    %c0_i32 = arith.constant 0 : i32
    %c0_i32_0 = arith.constant 0 : i32
    %c0_i32_1 = arith.constant 0 : i32
    return %c0_i32, %c0_i32_0 : i32, i32
  }
  func.func @transform_4(%arg0: i32) -> (i32, i32) {
    %c0_i32 = arith.constant 0 : i32
    %c0_i32_0 = arith.constant 0 : i32
    %c0_i32_1 = arith.constant 0 : i32
    return %c0_i32, %c0_i32_0 : i32, i32
  }
  func.func @transform_5(%arg0: i32) -> (i32, i32) {
    %c0_i32 = arith.constant 0 : i32
    %c0_i32_0 = arith.constant 0 : i32
    %c0_i32_1 = arith.constant 0 : i32
    return %c0_i32, %c0_i32_0 : i32, i32
  }
}

</mosaic_0001>

<bundles_post_ra>
// kernel: tpu_custom_call.1
= control target key start
LH: loop header
LB: loop body
LE: loop exit
PB: predicated region body
PF: predicated region fallthrough
CT: control target
= control target key end

     0   :  { %10 = vsyncpa [#allocation3], 0  ;;  %s579_s0 = inlined_call_operand.hbm [shape: f32[37,128], index: 0, kind: input, shape index: {}]   ;;  %s580_s1 = inlined_call_operand.hbm [shape: f32[8,37], index: 1, kind: input, shape index: {}]   ;;  %s581_s2 = inlined_call_operand.vmem [shape: f32[2,8], index: 2, kind: input, shape index: {}]   ;;  %s582_s3 = inlined_call_operand.vmem [shape: f32[2,128], index: 3, kind: input, shape index: {}]   ;;  %s583_s4 = inlined_call_operand.hbm [shape: f32[128,256], index: 4, kind: input, shape index: {}]   ;;  %s584_s5 = inlined_call_operand.hbm [shape: f32[2,256], index: 5, kind: output, shape index: {}]  }
   0x1   :  { %11 = vsyncpa [#allocation6], 0 }
   0x2   :  { %12 = vsyncpa [#allocation4], 0  ;;  %s519_s18 = smov [#allocation5]   ;;  %s520_s20 = smov [#allocation2]  }
   0x3   :  { %s31_s19 = sshll.u32 %s519_s18, 4  ;;  %s18_s21 = sshll.u32 %s520_s20, 4  ;;  %s32_s19 = int_to_ptr.vmem [resolvable:$true] %s31_s19  ;;  %s19_s21 = int_to_ptr.vmem [resolvable:$true] %s18_s21 }
   0x4   :  { %s441_s22 = scalar_lea.vmem %s32_s19, 128  ;;  %p446_p1 = scmp.lt.s32.totalorder %s32_s19, %s32_s19 }
   0x5   :  { %p442_p0 = scmp.ne.s32.totalorder %s32_s19, %s441_s22  ;;  %p447_p2 = scmp.lt.s32.totalorder %s441_s22, %s441_s22 }
   0x7   :  { %p448_p3 = por %p447_p2, %p446_p1 }
   0x9   :  { %p449_p4 = pnand %p448_p3, %p442_p0 }
   0xb   :  { %452 = shalt.err (!%p449_p4)
}
   0xc   :  { %34 = dma.hbm_to_vmem [thread:$0]  %s580_s1, 128, %s32_s19, [#allocation6]  }
   0xd   :  { %s461_s25 = scalar_lea.vmem %s19_s21, 640  ;;  %p466_p6 = scmp.lt.s32.totalorder %s19_s21, %s19_s21 }
   0xe   :  { %p462_p5 = scmp.ne.s32.totalorder %s19_s21, %s461_s25  ;;  %p467_p7 = scmp.lt.s32.totalorder %s461_s25, %s461_s25 }
  0x10   :  { %p468_p8 = por %p467_p7, %p466_p6 }
  0x12   :  { %p469_p9 = pnand %p468_p8, %p462_p5 }
  0x14   :  { %472 = shalt.err (!%p469_p9)
}
  0x15   :  { %s521_s26 = smov 128   ;;  %s522_s27 = smov 8  }
  0x16   :  { %24 = dma.hbm_to_vmem [thread:$0]  %s579_s0, 640, %s19_s21, [#allocation3], %s521_s26, %s521_s26, %s522_s27  }
  0x17   :  { %s523_s30 = smov [#allocation7]  }
  0x18   :  { %s44_s6 = sshll.u32 %s523_s30, 4  ;;  %s45_s6 = int_to_ptr.vmem [resolvable:$true] %s44_s6 }
  0x19   :  { %s481_s7 = scalar_lea.vmem %s45_s6, 4096  ;;  %p486_p11 = scmp.lt.s32.totalorder %s45_s6, %s45_s6 }
  0x1a   :  { %p482_p10 = scmp.ne.s32.totalorder %s45_s6, %s481_s7  ;;  %p487_p12 = scmp.lt.s32.totalorder %s481_s7, %s481_s7 }
  0x1c   :  { %p488_p13 = por %p487_p12, %p486_p11 }
  0x1e   :  { %p489_p0 = pnand %p488_p13, %p482_p10 }
  0x20   :  { %492 = shalt.err (!%p489_p0)
}
  0x21   :  { %s524_s1 = smov 256   ;;  %s525_s8 = smov 16  }
  0x22   :  { %50 = dma.hbm_to_vmem [thread:$0]  %s583_s4, 4096, %s45_s6, [#allocation6], %s524_s1, %s524_s1, %s525_s8  }
  0x23   :  { %513 = dma.done.wait [#allocation3], 640  }
  0x24   :  { %514 = vsyncadd [#allocation3], 4294966656 }
  0x25   :  { %515 = dma.done.wait [#allocation6], 4224  }
  0x26   :  { %516 = vsyncadd [#allocation6], 4294963072  ;;  %v526_v0 = vmov 0.0   ;;  %vm527_vm0 = vmmov 0   ;;  %vm70_vm1 = vcmask 1044480   ;;  %v64_v2 = vld [vmem:[#allocation2 + $0x18] sm:$0xff] }
  0x27   :  { %399 = vmatprep.subr.mxu0 %v526_v0  ;;  %409 = vmatprep.mubr.msk.f32.mxu0 %vm527_vm0, %v526_v0  ;;  %v65_v1 = vld [vmem:[#allocation2 + $0x20] sm:$0x1f]  ;;  %v63_v3 = vld [vmem:[#allocation2 + $0x10] sm:$0xff]  ;;  %v62_v4 = vld [vmem:[#allocation2 + $0x8] sm:$0xff]  ;;  %vm66_vm2 = vcmask 302080   ;;  %vm146_vm3 = vcmask 64512  }
  0x28   :  { %319 = vmatprep.mubr.f32.mxu1 %v526_v0  ;;  %400 = vmatpush3.msk.msra.mxu0 %vm70_vm1, %v65_v1  ;;  %v61_v5 = vld [vmem:[#allocation2] sm:$0xff]  ;;  %v60_v6 = vld [vmem:[#allocation5] sm:$0xff]  ;;  %v252_v9 = vld [vmem:[#allocation7 + $0xe8] sm:$0xff]  ;;  %vm326_vm4 = vcmask 1041408   ;;  %s528_s14 = smov [#allocation8]  }
  0x29   :  { %401 = vmatprep.subr.mxu0 %v526_v0  ;;  %v254_v7 = vld [vmem:[#allocation7 + $0xf8] sm:$0xff]  ;;  %v253_v8 = vld [vmem:[#allocation7 + $0xf0] sm:$0xff]  ;;  %v251_v10 = vld [vmem:[#allocation7 + $0xe0] sm:$0xff]  ;;  %s377_s15 = sshll.u32 %s528_s14, 4  ;;  %s378_s15 = int_to_ptr.vmem [resolvable:$true] %s377_s15 }
  0x2a   :  { %402 = vmatpush3.msra.mxu0 %v64_v2  ;;  %255 = vmatprep.subr.mxu1 %v254_v7  ;;  %v250_v11 = vld [vmem:[#allocation7 + $0xd8] sm:$0xff]  ;;  %v249_v12 = vld [vmem:[#allocation7 + $0xd0] sm:$0xff]  ;;  %v248_v13 = vld [vmem:[#allocation7 + $0xc8] sm:$0xff]  ;;  %s493_s16 = scalar_lea.vmem %s378_s15, 64  ;;  %p498_p2 = scmp.lt.s32.totalorder %s378_s15, %s378_s15 }
  0x2b   :  { %403 = vmatprep.subr.mxu0 %v526_v0  ;;  %256 = vmatpush1.msra.mxu1 %v253_v8  ;;  %v247_v14 = vld [vmem:[#allocation7 + $0xc0] sm:$0xff]  ;;  %v246_v15 = vld [vmem:[#allocation7 + $0xb8] sm:$0xff]  ;;  %v245_v16 = vld [vmem:[#allocation7 + $0xb0] sm:$0xff]  ;;  %p494_p1 = scmp.ne.s32.totalorder %s378_s15, %s493_s16  ;;  %p499_p3 = scmp.lt.s32.totalorder %s493_s16, %s493_s16 }
  0x2c   :  { %404 = vmatpush3.msra.mxu0 %v63_v3  ;;  %257 = vmatprep.subr.mxu1 %v252_v9  ;;  %v244_v17 = vld [vmem:[#allocation7 + $0xa8] sm:$0xff]  ;;  %v243_v18 = vld [vmem:[#allocation7 + $0xa0] sm:$0xff]  ;;  %v242_v19 = vld [vmem:[#allocation7 + $0x98] sm:$0xff] }
  0x2d   :  { %405 = vmatprep.subr.mxu0 %v526_v0  ;;  %258 = vmatpush1.msra.mxu1 %v251_v10  ;;  %v241_v20 = vld [vmem:[#allocation7 + $0x90] sm:$0xff]  ;;  %v240_v21 = vld [vmem:[#allocation7 + $0x88] sm:$0xff]  ;;  %v239_v22 = vld [vmem:[#allocation7 + $0x80] sm:$0xff]  ;;  %p500_p4 = por %p499_p3, %p498_p2 }
  0x2e   :  { %406 = vmatpush3.msra.mxu0 %v62_v4  ;;  %259 = vmatprep.subr.mxu1 %v250_v11  ;;  %v238_v23 = vld [vmem:[#allocation7 + $0x78] sm:$0xff]  ;;  %v237_v24 = vld [vmem:[#allocation7 + $0x70] sm:$0xff]  ;;  %v236_v25 = vld [vmem:[#allocation7 + $0x68] sm:$0xff] }
  0x2f   :  { %407 = vmatprep.subr.mxu0 %v526_v0  ;;  %260 = vmatpush1.msra.mxu1 %v249_v12  ;;  %v235_v26 = vld [vmem:[#allocation7 + $0x60] sm:$0xff]  ;;  %v234_v27 = vld [vmem:[#allocation7 + $0x58] sm:$0xff]  ;;  %v233_v28 = vld [vmem:[#allocation7 + $0x50] sm:$0xff]  ;;  %p501_p5 = pnand %p500_p4, %p494_p1 }
  0x30   :  { %408 = vmatpush3.msra.mxu0 %v61_v5  ;;  %261 = vmatprep.subr.mxu1 %v248_v13  ;;  %v232_v29 = vld [vmem:[#allocation7 + $0x48] sm:$0xff]  ;;  %v231_v30 = vld [vmem:[#allocation7 + $0x40] sm:$0xff]  ;;  %v230_v31 = vld [vmem:[#allocation7 + $0x38] sm:$0xff] }
  0x31   :  { %410 = vmatmul.mubr.msk.f32.vlgmr.msra.gmra.mxu0 %vm66_vm2, %v60_v6  ;;  %412 = vmatprep.subr.mxu0 %v526_v0  ;;  %v229_v32 = vld [vmem:[#allocation7 + $0x30] sm:$0xff]  ;;  %v228_v33 = vld [vmem:[#allocation7 + $0x28] sm:$0xff]  ;;  %v227_v38 = vld [vmem:[#allocation7 + $0x20] sm:$0xff] }
  0x32   :  { %414 = vmatprep.mubr.msk.f32.mxu0 %vm527_vm0, %v526_v0  ;;  %262 = vmatpush1.msra.mxu1 %v247_v14  ;;  %v145_v36 = vld [vmem:[%s581_s2] sm:$0x3]  ;;  %v226_v39 = vld [vmem:[#allocation7 + $0x18] sm:$0xff]  ;;  %v224_v41 = vld [vmem:[#allocation7 + $0x8] sm:$0xff] }
  0x33   :  { %263 = vmatprep.subr.mxu1 %v246_v15  ;;  %v225_v40 = vld [vmem:[#allocation7 + $0x10] sm:$0xff]  ;;  %v223_v42 = vld [vmem:[#allocation7] sm:$0xff] }
  0x34   :  { %264 = vmatpush1.msra.mxu1 %v245_v16  ;;  %v221_v44 = vld [vmem:[%s582_s3] sm:$0x3] }
  0x35   :  { %265 = vmatprep.subr.mxu1 %v244_v17 }
  0x36   :  { %266 = vmatpush1.msra.mxu1 %v243_v18 }
  0x37   :  { %267 = vmatprep.subr.mxu1 %v242_v19 }
  0x38   :  { %268 = vmatpush1.msra.mxu1 %v241_v20 }
  0x39   :  { %269 = vmatprep.subr.mxu1 %v240_v21 }
  0x3a   :  { %270 = vmatpush1.msra.mxu1 %v239_v22 }
  0x3b   :  { %271 = vmatprep.subr.mxu1 %v238_v23 }
  0x3c   :  { %272 = vmatpush1.msra.mxu1 %v237_v24 }
  0x3d   :  { %273 = vmatprep.subr.mxu1 %v236_v25 }
  0x3e   :  { %274 = vmatpush1.msra.mxu1 %v235_v26 }
  0x3f   :  { %275 = vmatprep.subr.mxu1 %v234_v27 }
  0x40   :  { %276 = vmatpush1.msra.mxu1 %v233_v28 }
  0x41   :  { %277 = vmatprep.subr.mxu1 %v232_v29 }
  0x42   :  { %278 = vmatpush1.msra.mxu1 %v231_v30 }
  0x43   :  { %279 = vmatprep.subr.mxu1 %v230_v31 }
  0x44   :  { %280 = vmatpush1.msra.mxu1 %v229_v32 }
  0x45   :  { %281 = vmatprep.subr.mxu1 %v228_v33 }
  0x46   :  { %282 = vmatpush1.msra.mxu1 %v227_v38 }
  0x47   :  { %283 = vmatprep.subr.mxu1 %v226_v39 }
  0x48   :  { %284 = vmatpush1.msra.mxu1 %v225_v40 }
  0x49   :  { %285 = vmatprep.subr.mxu1 %v224_v41 }
  0x4a   :  { %286 = vmatpush1.msra.mxu1 %v223_v42 }
  0xf1   :  { %v140_v34 = vpop.f32.mrf.mxu0 }
  0xf2   :  { %v144_v35 = vmax.f32 %v140_v34, 0.0 }
  0xf3   :  { %v411_v37 = vpop.f32.mrf.mxu0 }
  0xf4   :  { %413 = vmatpush3.msra.mxu0 %v144_v35 }
  0xf5   :  { %415 = vmatmul.mubr.msk.f32.vlgmr.msra.gmra.mxu0 %vm146_vm3, %v145_v36 }
 0x1b5   :  { %v216_v43 = vpop.f32.mrf.mxu0 }
 0x1b6   :  { %v220_v45 = vmax.f32 %v216_v43, 0.0 }
 0x1b7   :  { %v416_v46 = vpop.f32.mrf.mxu0 }
 0x1b8   :  { %v222_v47 = vmul.f32 %v221_v44, %v220_v45 }
 0x1ba   :  { %320 = vmatmul.mubr.f32.vlgmr.msra.gmra.mxu1 %v222_v47 }
 0x27a   :  { %v321_v48 = vpop.f32.mrf.mxu1 }
 0x27b   :  { %v327_v50 = vsel %vm326_vm4, %v321_v48, inf  ;;  %v339_v54 = vsel %vm326_vm4, %v321_v48, -inf }
 0x27c   :  { %v323_v49 = vpop.f32.mrf.mxu1 }
 0x27d   :  { %v328_v51 = vsel %vm326_vm4, %v323_v49, inf  ;;  %v340_v53 = vsel %vm326_vm4, %v323_v49, -inf }
 0x27e   :  { %v329_v52 = vmin.f32 %v327_v50, %v328_v51  ;;  %v341_v55 = vmax.f32 %v339_v54, %v340_v53 }
 0x280   :  { %330 = vmin.xlane.f32.xlu0 %v329_v52 }
 0x284   :  { %342 = vmax.xlane.f32.xlu0 %v341_v55 }
 0x309   :  { %v331_v56 = vpop.xlane.xlu0 %330 }
 0x30a   :  { %v332_v57 = vrot.slane %v331_v56, 4 }
 0x30c   :  { %v333_v58 = vmin.f32 %v331_v56, %v332_v57 }
 0x30d   :  { %v343_v59 = vpop.xlane.xlu0 %342 }
 0x30e   :  { %v334_v60 = vrot.slane %v333_v58, 2  ;;  %v344_v61 = vrot.slane %v343_v59, 4 }
 0x310   :  { %v345_v62 = vmax.f32 %v343_v59, %v344_v61  ;;  %v335_v63 = vmin.f32 %v333_v58, %v334_v60 }
 0x312   :  { %v346_v0 = vrot.slane %v345_v62, 2  ;;  %v336_v1 = vrot.slane %v335_v63, 1 }
 0x314   :  { %v347_v2 = vmax.f32 %v345_v62, %v346_v0  ;;  %v337_v3 = vmin.f32 %v335_v63, %v336_v1 }
 0x316   :  { %417 = vpush %v337_v3  ;;  %v348_v4 = vrot.slane %v347_v2, 1 }
 0x318   :  { %v349_v5 = vmax.f32 %v347_v2, %v348_v4 }
 0x31a   :  { %419 = vpush %v349_v5 }
 0x347   :  { %s418_s2 = spop %417 }
 0x348   :  { %v351_v7 = vstv %s418_s2 }
 0x349   :  { %v352_v8 = vsub.f32 %v321_v48, %v351_v7  ;;  %v353_v9 = vsub.f32 %v323_v49, %v351_v7 }
 0x34b   :  { %s420_s3 = spop %419 }
 0x34c   :  { %s354_s13 = ssub.f32 %s420_s3, %s418_s2 }
 0x34e   :  { %v355_v6 = vstv %s354_s13 }
 0x34f   :  { %431 = vrcp.f32 %v355_v6 }
 0x35c   :  { %v432_v10 = vpop.eup %431 }
 0x35d   :  { %v357_v11 = vmul.f32 %v432_v10, %v352_v8  ;;  %v358_v12 = vmul.f32 %v432_v10, %v353_v9 }
 0x35f   :  { %v361_v13 = vcombine.low %v357_v11, %v358_v12 }
 0x361   :  { %390 = vst.sshfl [vmem:[#allocation8] sm:$0x33 pattern:$0x76325410] %v361_v13 }
 0x362   :  { %504 = shalt.err (!%p501_p5)
}
 0x363   :  { %380 = dma.vmem_to_hbm [thread:$0]  %s378_s15, 64, %s584_s5, [#allocation4]  }
 0x364   :  { %517 = dma.done.wait [#allocation4], 64  }
 0x365   :  { %518 = vsyncadd [#allocation4], 4294967232 }
 0x366   :  { %384 = vsyncpa [#allocation3], 1 }
 0x367   :  { %385 = vsyncpa [#allocation6], 1 }
 0x368   :  { %386 = vsyncpa [#allocation4], 1 }

</bundles_post_ra>
